<compile_context>
chip_gen: v5e
topology: v5e:2x2
jax: 0.10.0
libtpu: 0.0.40
codegen_flags: <defaults>
</compile_context>

<pallas_src>
import functools

import jax
import jax.numpy as jnp
import numpy as np
from jax import lax
from jax.experimental import pallas as pl
from jax.experimental.pallas import tpu as pltpu

N, C_IN, H, W = 2, 4, 16, 16
C_HID = 32
NUM_CLASSES = 8
HO, WO = H // 2, W // 2          # spatial size after the stride-2 backbone conv
M = N * HO * WO                  # 128: batch folded into the matmul lane axis
K_RAW = 9 * C_IN                 # 36 im2col rows (kh, kw, cin)
K_PAD = 40                       # padded to a sublane multiple -> unmasked tiles
P_OUT = N * H * W                # 512: flattened prediction pixels (lane-dense)

VMEM_SPEC = pl.BlockSpec(memory_space=pltpu.MemorySpace.VMEM)


# ------------------------- host-side (numpy) constants ---------------------------- #
def _np_interp_matrix(out_size: int, in_size: int) -> np.ndarray:
    """Bilinear (align_corners=True) row-interpolation matrix, built with numpy."""
    scale = (in_size - 1) / (out_size - 1) if out_size > 1 else 0.0
    src = np.arange(out_size, dtype=np.float64) * scale
    i0 = np.clip(np.floor(src).astype(np.int64), 0, in_size - 1)
    i1 = np.clip(i0 + 1, 0, in_size - 1)
    frac = src - i0
    a = np.zeros((out_size, in_size), np.float64)
    a[np.arange(out_size), i0] += 1.0 - frac
    a[np.arange(out_size), i1] += frac
    return a.astype(np.float32)


def _np_upsample_matrix_t() -> np.ndarray:
    """U^T with U[p_out, m_in] = delta(n, n') * ah[y, i] * aw[x, j].

    p_out = n*H*W + y*W + x, m_in = n'*HO*WO + i*WO + j.  Shape [M, P_OUT].
    Baked as a literal so the jitted graph contains no scatter/trace-time work.
    """
    ah = _np_interp_matrix(H, HO)                                    # [H, HO]
    aw = _np_interp_matrix(W, WO)                                    # [W, WO]
    u_img = np.einsum("yi,xj->yxij", ah, aw).reshape(H * W, HO * WO)  # [256, 64]
    u = np.kron(np.eye(N, dtype=np.float32), u_img.astype(np.float32))  # [512, 128]
    return np.ascontiguousarray(u.T.astype(np.float32))              # [128, 512]


_AH = _np_interp_matrix(H, HO)
_AW = _np_interp_matrix(W, WO)
_UT = _np_upsample_matrix_t()


# --------------------------------- Pallas kernels --------------------------------- #
def _logits_t(p_ref, w1_ref, b1_ref, w2_ref, b2_ref):
    """Backbone (im2col matmul + ReLU) + 1x1 decode head, transposed orientation.

    p_ref : [K_PAD, M]  patches^T (lane-dense M = 128)
    w1_ref: [C_HID, K_PAD]      b1_ref: [C_HID, 1]  (column bias)
    w2_ref: [NUM_CLASSES, C_HID] b2_ref: [NUM_CLASSES, 1]
    returns logits^T [NUM_CLASSES, M].
    """
    h = jnp.dot(w1_ref[...], p_ref[...], preferred_element_type=jnp.float32)
    h = jnp.maximum(h + b1_ref[...], 0.0)                       # backbone ReLU
    o = jnp.dot(w2_ref[...], h, preferred_element_type=jnp.float32)
    return o + b2_ref[...]                                       # [NUM_CLASSES, M]


def _tensor_kernel(p_ref, w1_ref, b1_ref, w2_ref, b2_ref, o_ref):
    o_ref[...] = _logits_t(p_ref, w1_ref, b1_ref, w2_ref, b2_ref).astype(o_ref.dtype)


def _predict_kernel(p_ref, w1_ref, b1_ref, w2_ref, b2_ref, ut_ref, o_ref):
    o_t = _logits_t(p_ref, w1_ref, b1_ref, w2_ref, b2_ref)            # [C, M]
    # Bilinear upsample (align_corners=True) as one matmul against the precomputed
    # block-diagonal interpolation matrix U^T: [C, 128] @ [128, 512].
    # (Adding the head bias before the upsample is exact only because the
    #  align_corners=True interpolation rows sum to 1.)
    up = jnp.dot(o_t, ut_ref[...], preferred_element_type=jnp.float32)  # [C, P_OUT]
    # Dense argmax over the class (sublane) axis, first-max-wins like torch.argmax.
    cmax = jnp.max(up, axis=0, keepdims=True)                           # [1, P_OUT]
    ids = lax.broadcasted_iota(jnp.int32, up.shape, 0)                  # [C, P_OUT]
    idx = jnp.min(jnp.where(up == cmax, ids, NUM_CLASSES), axis=0, keepdims=True)
    o_ref[...] = idx                                                    # [1, P_OUT] int32


# ----------------------------------- JAX glue -------------------------------------- #
def _im2col_t(x_nchw):
    """3x3 / stride 2 / pad 1 patch extraction -> [K_PAD, M], transposed & lane-dense.

    Row index = kh*3*C_IN + kw*C_IN + cin (zero-padded to K_PAD),
    column index = n*HO*WO + i*WO + j.
    """
    xp = jnp.pad(x_nchw, ((0, 0), (0, 0), (1, 1), (1, 1)))
    taps = []
    for kh in range(3):
        for kw in range(3):
            taps.append(xp[:, :, kh:kh + 2 * HO:2, kw:kw + 2 * WO:2])  # [N,C_IN,HO,WO]
    p = jnp.stack(taps, axis=0)                       # [9, N, C_IN, HO, WO]
    p = jnp.transpose(p, (0, 2, 1, 3, 4))             # [9, C_IN, N, HO, WO]
    p = p.reshape(K_RAW, M)                           # [(kh,kw,cin), (n,i,j)]
    return jnp.pad(p, ((0, K_PAD - K_RAW), (0, 0)))   # [40, 128], zero K-padding


@functools.partial(jax.jit, static_argnames=("mode",))
def base_segm_forward(x_nchw, params, mode="tensor"):
    w1t, b1, w2t, b2 = params
    patches_t = _im2col_t(x_nchw.astype(jnp.float32))                 # [40, 128]

    if mode == "tensor":
        logits_t = pl.pallas_call(
            _tensor_kernel,
            out_shape=jax.ShapeDtypeStruct((NUM_CLASSES, M), jnp.float32),
            in_specs=[VMEM_SPEC] * 5,
            out_specs=VMEM_SPEC,
        )(patches_t, w1t, b1, w2t, b2)
        # [C, N*HO*WO] -> NCHW (wrapper-side layout plumbing, fused by XLA)
        return jnp.transpose(logits_t.reshape(NUM_CLASSES, N, HO, WO), (1, 0, 2, 3))

    if mode == "predict":
        preds_flat = pl.pallas_call(
            _predict_kernel,
            out_shape=jax.ShapeDtypeStruct((1, P_OUT), jnp.int32),
            in_specs=[VMEM_SPEC] * 6,
            out_specs=VMEM_SPEC,
        )(patches_t, w1t, b1, w2t, b2, _UT)
        return preds_flat.reshape(N, H, W)

    # TODO(synk): "loss" mode needs concrete criterion modules (CrossEntropyLoss with
    # ignore_index + get_valid_label_mask); not representable without a criterion impl.
    raise NotImplementedError(f"mode={mode!r} not implemented in this synthetic kernel")


# --------------------------------- reference path ---------------------------------- #
def _ref_logits(x_nchw, wconv, bconv, whead, bhead):
    y = jax.lax.conv_general_dilated(
        x_nchw, wconv, (2, 2), ((1, 1), (1, 1)),
        dimension_numbers=("NCHW", "OIHW", "NCHW"),
    )
    y = jax.nn.relu(y + bconv[None, :, None, None])
    z = jax.lax.conv_general_dilated(
        y, whead[:, :, None, None], (1, 1), "VALID",
        dimension_numbers=("NCHW", "OIHW", "NCHW"),
    )
    return z + bhead[None, :, None, None]


if __name__ == "__main__":
    key = jax.random.PRNGKey(0)
    kx, k1, k2, k3, k4 = jax.random.split(key, 5)

    x = jax.random.normal(kx, (N, C_IN, H, W), jnp.float32)

    # deterministic synthetic parameters (PyTorch conv layout: OIHW)
    wconv = jax.random.normal(k1, (C_HID, C_IN, 3, 3), jnp.float32) * 0.1
    bconv = jax.random.normal(k2, (C_HID,), jnp.float32) * 0.1
    whead = jax.random.normal(k3, (NUM_CLASSES, C_HID), jnp.float32) * 0.1
    bhead = jax.random.normal(k4, (NUM_CLASSES,), jnp.float32) * 0.1

    # repack (done once, outside the forward dispatch):
    #   w1t [C_HID, K_PAD]  column index = kh*3*C_IN + kw*C_IN + cin, zero-padded
    #   b1  [C_HID, 1]      column bias
    #   w2t [NUM_CLASSES, C_HID], b2 [NUM_CLASSES, 1]
    w1t = jnp.pad(jnp.transpose(wconv, (0, 2, 3, 1)).reshape(C_HID, K_RAW),
                  ((0, 0), (0, K_PAD - K_RAW)))
    b1 = bconv.reshape(C_HID, 1)
    w2t = whead
    b2 = bhead.reshape(NUM_CLASSES, 1)
    params = (w1t, b1, w2t, b2)

    # mode="tensor": raw decode-head logits (NCHW), checked against lax.conv reference
    logits = jax.block_until_ready(base_segm_forward(x, params, mode="tensor"))
    assert logits.shape == (N, NUM_CLASSES, HO, WO)
    ref = jax.block_until_ready(_ref_logits(x, wconv, bconv, whead, bhead))
    np.testing.assert_allclose(np.asarray(logits), np.asarray(ref), rtol=1e-4, atol=1e-4)

    # mode="predict": bilinear (align_corners=True) upsample to input size + argmax
    preds = jax.block_until_ready(base_segm_forward(x, params, mode="predict"))
    assert preds.shape == (N, H, W) and preds.dtype == jnp.int32

    # reference predict path; only enforce agreement where the top-2 logit gap is
    # decisive (avoids flakiness from ~1e-6 float-ordering differences on exact ties)
    up_ref = jnp.einsum("yi,xj,ncij->ncyx", jnp.asarray(_AH), jnp.asarray(_AW), ref)
    preds_ref = jnp.argmax(up_ref, axis=1).astype(jnp.int32)
    top2 = jnp.sort(up_ref, axis=1)[:, -2:, :, :]
    decisive = np.asarray(top2[:, 1] - top2[:, 0]) > 1e-3
    mismatch = np.asarray(preds) != np.asarray(preds_ref)
    assert not np.any(mismatch & decisive), "predict-mode argmax mismatch"

    print("KERNEL_OK")
</pallas_src>

<mosaic_0001>
module attributes {stable_mosaic.version = 11 : i64} {
  func.func @_tensor_kernel(%arg0: memref<40x128xf32, #tpu.memory_space<vmem>>, %arg1: memref<32x40xf32, #tpu.memory_space<vmem>>, %arg2: memref<32x1xf32, #tpu.memory_space<vmem>>, %arg3: memref<8x32xf32, #tpu.memory_space<vmem>>, %arg4: memref<8x1xf32, #tpu.memory_space<vmem>>, %arg5: memref<8x128xf32, #tpu.memory_space<vmem>>) attributes {dimension_semantics = [], scalar_prefetch = 0 : i64, scratch_operands = 0 : i64, tpu.core_type = #tpu.core_type<tc>} {
    %c0 = arith.constant 0 : index
    %c0_0 = arith.constant 0 : index
    %0 = vector.load %arg1[%c0, %c0_0] : memref<32x40xf32, #tpu.memory_space<vmem>>, vector<32x40xf32>
    %c0_1 = arith.constant 0 : index
    %c0_2 = arith.constant 0 : index
    %1 = vector.load %arg0[%c0_1, %c0_2] : memref<40x128xf32, #tpu.memory_space<vmem>>, vector<40x128xf32>
    %cst = arith.constant dense<0.000000e+00> : vector<32x128xf32>
    %2 = tpu.matmul %0, %1, %cst {dimension_numbers = #tpu.dot_dimension_numbers<[1], [0], [0], [1], [0, 0, 1, 1], [], []>} : vector<32x40xf32>, vector<40x128xf32>, vector<32x128xf32> -> vector<32x128xf32>
    %c0_3 = arith.constant 0 : index
    %c0_4 = arith.constant 0 : index
    %3 = vector.load %arg2[%c0_3, %c0_4] : memref<32x1xf32, #tpu.memory_space<vmem>>, vector<32x1xf32>
    %4 = vector.broadcast %3 : vector<32x1xf32> to vector<32x128xf32>
    %5 = arith.addf %2, %4 : vector<32x128xf32>
    %cst_5 = arith.constant 0.000000e+00 : f32
    %6 = vector.broadcast %cst_5 : f32 to vector<32x128xf32>
    %7 = arith.maximumf %5, %6 : vector<32x128xf32>
    %c0_6 = arith.constant 0 : index
    %c0_7 = arith.constant 0 : index
    %8 = vector.load %arg3[%c0_6, %c0_7] : memref<8x32xf32, #tpu.memory_space<vmem>>, vector<8x32xf32>
    %cst_8 = arith.constant dense<0.000000e+00> : vector<8x128xf32>
    %9 = tpu.matmul %8, %7, %cst_8 {dimension_numbers = #tpu.dot_dimension_numbers<[1], [0], [0], [1], [0, 0, 1, 1], [], []>} : vector<8x32xf32>, vector<32x128xf32>, vector<8x128xf32> -> vector<8x128xf32>
    %c0_9 = arith.constant 0 : index
    %c0_10 = arith.constant 0 : index
    %10 = vector.load %arg4[%c0_9, %c0_10] : memref<8x1xf32, #tpu.memory_space<vmem>>, vector<8x1xf32>
    %11 = vector.broadcast %10 : vector<8x1xf32> to vector<8x128xf32>
    %12 = arith.addf %9, %11 : vector<8x128xf32>
    %c0_11 = arith.constant 0 : index
    %c0_12 = arith.constant 0 : index
    %13 = vector.load %arg5[%c0_11, %c0_12] : memref<8x128xf32, #tpu.memory_space<vmem>>, vector<8x128xf32>
    tpu.vector_store %arg5[%c0_11, %c0_12], %12 {strides = array<i32>} : memref<8x128xf32, #tpu.memory_space<vmem>>, vector<8x128xf32>,
    return
  }
}

</mosaic_0001>

<bundles_post_ra>
// kernel: base_segm_forward.1
= control target key start
LH: loop header
LB: loop body
LE: loop exit
PB: predicated region body
PF: predicated region fallthrough
CT: control target
= control target key end

     0   :  { %v154_v2 = vmov 0   ;;  %vm53_vm0 = vcmask 326656   ;;  %vm106_vm1 = vcmask 261120   ;;  %s237_s0 = inlined_call_operand.vmem [shape: f32[40,128], index: 0, kind: input, shape index: {}]   ;;  %s238_s2 = inlined_call_operand.vmem [shape: f32[32,1], index: 2, kind: input, shape index: {}]   ;;  %s239_s1 = inlined_call_operand.vmem [shape: f32[32,40], index: 1, kind: input, shape index: {}]   ;;  %s240_s4 = inlined_call_operand.vmem [shape: f32[8,1], index: 4, kind: input, shape index: {}]   ;;  %s241_s3 = inlined_call_operand.vmem [shape: f32[8,32], index: 3, kind: input, shape index: {}]   ;;  %s242_s5 = inlined_call_operand.vmem [shape: f32[8,128], index: 5, kind: output, shape index: {}]  }
   0x1   :  { %v28_v0 = vld [vmem:[%s237_s0 + $0x20] sm:$0xff]  ;;  %v27_v1 = vld [vmem:[%s237_s0 + $0x18] sm:$0xff]  ;;  %151 = vset.pattern.permute.xlu0 %v154_v2  ;;  %152 = vset.pattern.permute.xlu1 %v154_v2  ;;  %v26_v3 = vld [vmem:[%s237_s0 + $0x10] sm:$0xff] }
   0x2   :  { %141 = vmatpush.msra.mxu3 %v28_v0  ;;  %140 = vmatpush.msra.mxu2 %v28_v0  ;;  %v32_v4 = vld [vmem:[%s238_s2 + $0x18] sm:$0xff]  ;;  %v30_v5 = vld [vmem:[%s238_s2 + $0x8] sm:$0xff]  ;;  %v24_v7 = vld [vmem:[%s237_s0] sm:$0xff] }
   0x3   :  { %77 = vmatpush.msra.mxu0 %v28_v0  ;;  %153 = vset.pattern.permute.xlu2 %v154_v2  ;;  %v25_v6 = vld [vmem:[%s237_s0 + $0x8] sm:$0xff]  ;;  %v22_v8 = vld [vmem:[%s239_s1 + $0x10] sm:$0xff]  ;;  %v20_v10 = vld [vmem:[%s239_s1] sm:$0xff] }
   0x4   :  { %143 = vmatpush.msra.mxu3 %v27_v1  ;;  %142 = vmatpush.msra.mxu2 %v27_v1  ;;  %v21_v9 = vld [vmem:[%s239_s1 + $0x8] sm:$0xff]  ;;  %v31_v11 = vld [vmem:[%s238_s2 + $0x10] sm:$0xff]  ;;  %v29_v12 = vld [vmem:[%s238_s2] sm:$0xff] }
   0x5   :  { %78 = vmatpush.msra.mxu0 %v27_v1  ;;  %50 = vperm.xlu0 %151, %v32_v4   ;;  %v23_v13 = vld [vmem:[%s239_s1 + $0x18] sm:$0xff]  ;;  %v100_v14 = vld [vmem:[%s240_s4] sm:$0xff] }
   0x6   :  { %145 = vmatpush.msra.mxu3 %v26_v3  ;;  %144 = vmatpush.msra.mxu2 %v26_v3  ;;  %v99_v31 = vld [vmem:[%s241_s3] sm:$0xff] }
   0x7   :  { %79 = vmatpush.msra.mxu0 %v26_v3  ;;  %40 = vperm.xlu1 %152, %v30_v5  }
   0x8   :  { %147 = vmatpush.msra.mxu3 %v25_v6  ;;  %146 = vmatpush.msra.mxu2 %v25_v6 }
   0x9   :  { %80 = vmatpush.msra.mxu0 %v25_v6  ;;  %103 = vperm.xlu2 %153, %v100_v14  }
   0xa   :  { %149 = vmatpush.msra.mxu3 %v24_v7  ;;  %148 = vmatpush.msra.mxu2 %v24_v7 }
   0xb   :  { %137 = vmatmul.msk.f32.vlgmr.msra.gmra.mxu3 %vm53_vm0, %v22_v8  ;;  %136 = vmatmul.msk.f32.vlgmr.msra.gmra.mxu2 %vm53_vm0, %v21_v9 }
   0xc   :  { %81 = vmatpush.msra.mxu0 %v24_v7 }
   0xd   :  { %135 = vmatmul.msk.f32.vlgmr.msra.gmra.mxu0 %vm53_vm0, %v20_v10  ;;  %45 = vperm.xlu0 %151, %v31_v11  }
   0xf   :  { %35 = vperm.xlu1 %152, %v29_v12  }
  0x13   :  { %138 = vmatmul.msk.f32.gmra.mxu3 %vm53_vm0, %v23_v13 }
  0x63   :  { %v104_v32 = vpop.permute.xlu2 %103 }
  0x77   :  { %v51_v15 = vpop.permute.xlu0 %50 }
  0x79   :  { %v41_v16 = vpop.permute.xlu1 %40 }
  0x7f   :  { %v46_v18 = vpop.permute.xlu0 %45 }
  0x81   :  { %v36_v23 = vpop.permute.xlu1 %35 }
  0x8a   :  { %v83_v24 = vpop.f32.mrf.mxu0 }
  0x8b   :  { %v84_v28 = vadd.f32 %v83_v24, %v36_v23 }
  0x8d   :  { %v95_v30 = vmax.f32 %v84_v28, 0.0 }
  0x8e   :  { %v89_v17 = vpop.f32.mrf.mxu3  ;;  %v86_v19 = vpop.f32.mrf.mxu2 }
  0x8f   :  { %v90_v21 = vadd.f32 %v89_v17, %v46_v18  ;;  %v87_v25 = vadd.f32 %v86_v19, %v41_v16 }
  0x91   :  { %v97_v27 = vmax.f32 %v90_v21, 0.0  ;;  %v96_v29 = vmax.f32 %v87_v25, 0.0 }
  0x96   :  { %v92_v20 = vpop.f32.mrf.mxu3 }
  0x97   :  { %v93_v22 = vadd.f32 %v92_v20, %v51_v15 }
  0x99   :  { %v98_v26 = vmax.f32 %v93_v22, 0.0 }
  0x9b   :  { %122 = vmatpush.msra.mxu1 %v98_v26 }
  0x9d   :  { %123 = vmatpush.msra.mxu1 %v97_v27 }
  0x9f   :  { %124 = vmatpush.msra.mxu1 %v96_v29 }
  0xa1   :  { %125 = vmatpush.msra.mxu1 %v95_v30 }
  0xa2   :  { %139 = vmatmul.msk.f32.vlgmr.msra.gmra.mxu1 %vm106_vm1, %v99_v31 }
 0x11f   :  { %v127_v33 = vpop.f32.mrf.mxu1 }
 0x120   :  { %v128_v34 = vadd.f32 %v127_v33, %v104_v32 }
 0x122   :  { %130 = vst [vmem:[%s242_s5] sm:$0xff] %v128_v34 }

</bundles_post_ra>
